<compile_context>
chip_gen: v6e
topology: v6e:2x2x1
jax: 0.10.0
libtpu: 0.0.40
codegen_flags: <defaults>
</compile_context>

<pallas_src>
import jax
import jax.numpy as jnp
from jax.experimental import pallas as pl
from jax.experimental.pallas import tpu as pltpu

_IN, _HID, _OUT = 5, 4, 2


def _consumer_actor_kernel(x_ref, w1_ref, b1_ref, w2_ref, b2_ref, o_ref):
    # Feature-major (lane-dense) tiles:
    #   x_ref : (5, TB)   w1_ref: (4, 5)   b1_ref: (4, 1)
    #   w2_ref: (2, 4)    b2_ref: (2, 1)   o_ref : (2, TB)
    x = x_ref[...]
    w1 = w1_ref[...]
    w2 = w2_ref[...]
    tb = x.shape[1]

    # Layer 1: h = relu(W1 @ x + b1).  Unrolled K=5 VPU MACs: each term is a
    # (4,1) weight-column splat times a (1,TB) lane-dense input row; bias is
    # folded into the accumulator init.
    h = jnp.broadcast_to(b1_ref[...], (_HID, tb))
    for k in range(_IN):
        h = h + w1[:, k:k + 1] * x[k:k + 1, :]
    h = jnp.maximum(h, 0.0)  # ReLU

    # Layer 2: z = W2 @ h + b2.  Unrolled K=4 MACs.
    z = jnp.broadcast_to(b2_ref[...], (_OUT, tb))
    for k in range(_HID):
        z = z + w2[:, k:k + 1] * h[k:k + 1, :]

    # Exact sigmoid (matches PyTorch); exp rides the EUP slot, divide is VPU.
    o_ref[...] = (1.0 / (1.0 + jnp.exp(-z))).astype(o_ref.dtype)


def consumer_actor_forward(x, w1, b1, w2, b2, *, block_b=4096,
                           small_b_threshold=1024):
    """ConsumerActor forward: sigmoid(relu(x @ w1.T + b1) @ w2.T + b2).

    x : (B, 5) f32.  w1: (4, 5), b1: (4,), w2: (2, 4), b2: (2,)  (PyTorch layout).
    Returns (B, 2) f32.
    """
    B = x.shape[0]
    x_t = x.T                        # (5, B): batch becomes the lane dimension.
    b1_2d = b1.reshape(_HID, 1)
    b2_2d = b2.reshape(_OUT, 1)
    out_dtype = x.dtype

    if B < small_b_threshold:
        # Genuinely small batch: single VMEM block, no grid/pipeline bookkeeping.
        out_t = pl.pallas_call(
            _consumer_actor_kernel,
            out_shape=jax.ShapeDtypeStruct((_OUT, B), out_dtype),
            in_specs=[pl.BlockSpec(memory_space=pltpu.MemorySpace.VMEM)] * 5,
            out_specs=pl.BlockSpec(memory_space=pltpu.MemorySpace.VMEM),
        )(x_t, w1, b1_2d, w2, b2_2d)
        return out_t.T

    # Large batch: 1-D grid over the lane (batch) axis; partial last block is
    # masked by Pallas.  Weights/biases use constant index maps (VMEM-resident).
    block_b = max(128, (block_b // 128) * 128)      # lane-aligned tile
    half_b = -(-B // 2)                             # ceil(B/2)
    half_b = -(-half_b // 128) * 128                # round up to lane multiple
    block_b = min(block_b, half_b)                  # >= 2 grid steps (v7x megacore)
    nb = pl.cdiv(B, block_b)

    out_t = pl.pallas_call(
        _consumer_actor_kernel,
        out_shape=jax.ShapeDtypeStruct((_OUT, B), out_dtype),
        grid=(nb,),
        in_specs=[
            pl.BlockSpec((_IN, block_b), lambda i: (0, i)),
            pl.BlockSpec((_HID, _IN), lambda i: (0, 0)),
            pl.BlockSpec((_HID, 1), lambda i: (0, 0)),
            pl.BlockSpec((_OUT, _HID), lambda i: (0, 0)),
            pl.BlockSpec((_OUT, 1), lambda i: (0, 0)),
        ],
        out_specs=pl.BlockSpec((_OUT, block_b), lambda i: (0, i)),
        compiler_params=pltpu.CompilerParams(
            dimension_semantics=("parallel",),
        ),
    )(x_t, w1, b1_2d, w2, b2_2d)
    return out_t.T


def _reference_forward(x, w1, b1, w2, b2):
    h = jnp.maximum(x @ w1.T + b1[None, :], 0.0)
    return jax.nn.sigmoid(h @ w2.T + b2[None, :])


if __name__ == "__main__":
    key = jax.random.PRNGKey(0)
    k_x1, k_x2, k_x3, k_w1, k_b1, k_w2, k_b2 = jax.random.split(key, 7)

    # nn.Linear default init: uniform(-1/sqrt(fan_in), 1/sqrt(fan_in)),
    # weights in PyTorch (out_features, in_features) layout.
    bound1 = 1.0 / jnp.sqrt(5.0)
    bound2 = 1.0 / jnp.sqrt(4.0)
    w1 = jax.random.uniform(k_w1, (_HID, _IN), minval=-bound1, maxval=bound1,
                            dtype=jnp.float32)
    b1 = jax.random.uniform(k_b1, (_HID,), minval=-bound1, maxval=bound1,
                            dtype=jnp.float32)
    w2 = jax.random.uniform(k_w2, (_OUT, _HID), minval=-bound2, maxval=bound2,
                            dtype=jnp.float32)
    b2 = jax.random.uniform(k_b2, (_OUT,), minval=-bound2, maxval=bound2,
                            dtype=jnp.float32)

    # Small batch of observations [inflexible demand, ES content, buffer, ToU, FiT]
    # -> gridless single-VMEM-block path.
    x_small = jax.random.uniform(k_x1, (8, _IN), dtype=jnp.float32)
    out_small = jax.block_until_ready(
        consumer_actor_forward(x_small, w1, b1, w2, b2))
    ref_small = _reference_forward(x_small, w1, b1, w2, b2)
    assert out_small.shape == (8, _OUT)
    assert jnp.allclose(out_small, ref_small, atol=1e-5, rtol=1e-5), \
        "small-batch mismatch vs reference"

    # Larger even batch -> gridded lane-dense path (2 blocks, "parallel" axis).
    x_big = jax.random.uniform(k_x2, (2048, _IN), dtype=jnp.float32)
    out_big = jax.block_until_ready(
        consumer_actor_forward(x_big, w1, b1, w2, b2))
    ref_big = _reference_forward(x_big, w1, b1, w2, b2)
    assert out_big.shape == (2048, _OUT)
    assert jnp.allclose(out_big, ref_big, atol=1e-5, rtol=1e-5), \
        "large-batch mismatch vs reference"

    # Ragged batch -> gridded path with a masked partial last block.
    x_rag = jax.random.uniform(k_x3, (2500, _IN), dtype=jnp.float32)
    out_rag = jax.block_until_ready(
        consumer_actor_forward(x_rag, w1, b1, w2, b2))
    ref_rag = _reference_forward(x_rag, w1, b1, w2, b2)
    assert out_rag.shape == (2500, _OUT)
    assert jnp.allclose(out_rag, ref_rag, atol=1e-5, rtol=1e-5), \
        "ragged-batch mismatch vs reference"

    print("KERNEL_OK")
</pallas_src>

<mosaic_0001>
module attributes {stable_mosaic.version = 11 : i64} {
  func.func @_consumer_actor_kernel(%arg0: memref<5x8xf32, #tpu.memory_space<vmem>>, %arg1: memref<4x5xf32, #tpu.memory_space<vmem>>, %arg2: memref<4x1xf32, #tpu.memory_space<vmem>>, %arg3: memref<2x4xf32, #tpu.memory_space<vmem>>, %arg4: memref<2x1xf32, #tpu.memory_space<vmem>>, %arg5: memref<2x8xf32, #tpu.memory_space<vmem>>) attributes {dimension_semantics = [], scalar_prefetch = 0 : i64, scratch_operands = 0 : i64, tpu.core_type = #tpu.core_type<tc>} {
    %c0 = arith.constant 0 : index
    %c0_0 = arith.constant 0 : index
    %0 = vector.load %arg0[%c0, %c0_0] : memref<5x8xf32, #tpu.memory_space<vmem>>, vector<5x8xf32>
    %c0_1 = arith.constant 0 : index
    %c0_2 = arith.constant 0 : index
    %1 = vector.load %arg1[%c0_1, %c0_2] : memref<4x5xf32, #tpu.memory_space<vmem>>, vector<4x5xf32>
    %c0_3 = arith.constant 0 : index
    %c0_4 = arith.constant 0 : index
    %2 = vector.load %arg3[%c0_3, %c0_4] : memref<2x4xf32, #tpu.memory_space<vmem>>, vector<2x4xf32>
    %c0_5 = arith.constant 0 : index
    %c0_6 = arith.constant 0 : index
    %3 = vector.load %arg2[%c0_5, %c0_6] : memref<4x1xf32, #tpu.memory_space<vmem>>, vector<4x1xf32>
    %4 = vector.shape_cast %3 : vector<4x1xf32> to vector<4x1xf32>
    %5 = vector.broadcast %4 : vector<4x1xf32> to vector<4x8xf32>
    %6 = vector.extract_strided_slice %1 {offsets = [0, 0], sizes = [4, 1], strides = [1, 1]} : vector<4x5xf32> to vector<4x1xf32>
    %7 = vector.extract_strided_slice %0 {offsets = [0, 0], sizes = [1, 8], strides = [1, 1]} : vector<5x8xf32> to vector<1x8xf32>
    %8 = vector.broadcast %6 : vector<4x1xf32> to vector<4x8xf32>
    %9 = vector.broadcast %7 : vector<1x8xf32> to vector<4x8xf32>
    %10 = arith.mulf %8, %9 : vector<4x8xf32>
    %11 = arith.addf %5, %10 : vector<4x8xf32>
    %12 = vector.extract_strided_slice %1 {offsets = [0, 1], sizes = [4, 1], strides = [1, 1]} : vector<4x5xf32> to vector<4x1xf32>
    %13 = vector.extract_strided_slice %0 {offsets = [1, 0], sizes = [1, 8], strides = [1, 1]} : vector<5x8xf32> to vector<1x8xf32>
    %14 = vector.broadcast %12 : vector<4x1xf32> to vector<4x8xf32>
    %15 = vector.broadcast %13 : vector<1x8xf32> to vector<4x8xf32>
    %16 = arith.mulf %14, %15 : vector<4x8xf32>
    %17 = arith.addf %11, %16 : vector<4x8xf32>
    %18 = vector.extract_strided_slice %1 {offsets = [0, 2], sizes = [4, 1], strides = [1, 1]} : vector<4x5xf32> to vector<4x1xf32>
    %19 = vector.extract_strided_slice %0 {offsets = [2, 0], sizes = [1, 8], strides = [1, 1]} : vector<5x8xf32> to vector<1x8xf32>
    %20 = vector.broadcast %18 : vector<4x1xf32> to vector<4x8xf32>
    %21 = vector.broadcast %19 : vector<1x8xf32> to vector<4x8xf32>
    %22 = arith.mulf %20, %21 : vector<4x8xf32>
    %23 = arith.addf %17, %22 : vector<4x8xf32>
    %24 = vector.extract_strided_slice %1 {offsets = [0, 3], sizes = [4, 1], strides = [1, 1]} : vector<4x5xf32> to vector<4x1xf32>
    %25 = vector.extract_strided_slice %0 {offsets = [3, 0], sizes = [1, 8], strides = [1, 1]} : vector<5x8xf32> to vector<1x8xf32>
    %26 = vector.broadcast %24 : vector<4x1xf32> to vector<4x8xf32>
    %27 = vector.broadcast %25 : vector<1x8xf32> to vector<4x8xf32>
    %28 = arith.mulf %26, %27 : vector<4x8xf32>
    %29 = arith.addf %23, %28 : vector<4x8xf32>
    %30 = vector.extract_strided_slice %1 {offsets = [0, 4], sizes = [4, 1], strides = [1, 1]} : vector<4x5xf32> to vector<4x1xf32>
    %31 = vector.extract_strided_slice %0 {offsets = [4, 0], sizes = [1, 8], strides = [1, 1]} : vector<5x8xf32> to vector<1x8xf32>
    %32 = vector.broadcast %30 : vector<4x1xf32> to vector<4x8xf32>
    %33 = vector.broadcast %31 : vector<1x8xf32> to vector<4x8xf32>
    %34 = arith.mulf %32, %33 : vector<4x8xf32>
    %35 = arith.addf %29, %34 : vector<4x8xf32>
    %cst = arith.constant 0.000000e+00 : f32
    %36 = vector.broadcast %cst : f32 to vector<4x8xf32>
    %37 = arith.maximumf %35, %36 : vector<4x8xf32>
    %c0_7 = arith.constant 0 : index
    %c0_8 = arith.constant 0 : index
    %38 = vector.load %arg4[%c0_7, %c0_8] : memref<2x1xf32, #tpu.memory_space<vmem>>, vector<2x1xf32>
    %39 = vector.shape_cast %38 : vector<2x1xf32> to vector<2x1xf32>
    %40 = vector.broadcast %39 : vector<2x1xf32> to vector<2x8xf32>
    %41 = vector.extract_strided_slice %2 {offsets = [0, 0], sizes = [2, 1], strides = [1, 1]} : vector<2x4xf32> to vector<2x1xf32>
    %42 = vector.extract_strided_slice %37 {offsets = [0, 0], sizes = [1, 8], strides = [1, 1]} : vector<4x8xf32> to vector<1x8xf32>
    %43 = vector.broadcast %41 : vector<2x1xf32> to vector<2x8xf32>
    %44 = vector.broadcast %42 : vector<1x8xf32> to vector<2x8xf32>
    %45 = arith.mulf %43, %44 : vector<2x8xf32>
    %46 = arith.addf %40, %45 : vector<2x8xf32>
    %47 = vector.extract_strided_slice %2 {offsets = [0, 1], sizes = [2, 1], strides = [1, 1]} : vector<2x4xf32> to vector<2x1xf32>
    %48 = vector.extract_strided_slice %37 {offsets = [1, 0], sizes = [1, 8], strides = [1, 1]} : vector<4x8xf32> to vector<1x8xf32>
    %49 = vector.broadcast %47 : vector<2x1xf32> to vector<2x8xf32>
    %50 = vector.broadcast %48 : vector<1x8xf32> to vector<2x8xf32>
    %51 = arith.mulf %49, %50 : vector<2x8xf32>
    %52 = arith.addf %46, %51 : vector<2x8xf32>
    %53 = vector.extract_strided_slice %2 {offsets = [0, 2], sizes = [2, 1], strides = [1, 1]} : vector<2x4xf32> to vector<2x1xf32>
    %54 = vector.extract_strided_slice %37 {offsets = [2, 0], sizes = [1, 8], strides = [1, 1]} : vector<4x8xf32> to vector<1x8xf32>
    %55 = vector.broadcast %53 : vector<2x1xf32> to vector<2x8xf32>
    %56 = vector.broadcast %54 : vector<1x8xf32> to vector<2x8xf32>
    %57 = arith.mulf %55, %56 : vector<2x8xf32>
    %58 = arith.addf %52, %57 : vector<2x8xf32>
    %59 = vector.extract_strided_slice %2 {offsets = [0, 3], sizes = [2, 1], strides = [1, 1]} : vector<2x4xf32> to vector<2x1xf32>
    %60 = vector.extract_strided_slice %37 {offsets = [3, 0], sizes = [1, 8], strides = [1, 1]} : vector<4x8xf32> to vector<1x8xf32>
    %61 = vector.broadcast %59 : vector<2x1xf32> to vector<2x8xf32>
    %62 = vector.broadcast %60 : vector<1x8xf32> to vector<2x8xf32>
    %63 = arith.mulf %61, %62 : vector<2x8xf32>
    %64 = arith.addf %58, %63 : vector<2x8xf32>
    %cst_9 = arith.constant 0.000000e+00 : f32
    %65 = vector.broadcast %cst_9 : f32 to vector<2x8xf32>
    %66 = arith.subf %65, %64 : vector<2x8xf32>
    %67 = math.exp %66 : vector<2x8xf32>
    %cst_10 = arith.constant 1.000000e+00 : f32
    %68 = vector.broadcast %cst_10 : f32 to vector<2x8xf32>
    %69 = arith.addf %68, %67 : vector<2x8xf32>
    %cst_11 = arith.constant 1.000000e+00 : f32
    %70 = vector.broadcast %cst_11 : f32 to vector<2x8xf32>
    %71 = arith.divf %70, %69 : vector<2x8xf32>
    %c0_12 = arith.constant 0 : index
    %c0_13 = arith.constant 0 : index
    %72 = vector.load %arg5[%c0_12, %c0_13] : memref<2x8xf32, #tpu.memory_space<vmem>>, vector<2x8xf32>
    tpu.vector_store %arg5[%c0_12, %c0_13], %71 {strides = array<i32>} : memref<2x8xf32, #tpu.memory_space<vmem>>, vector<2x8xf32>,
    return
  }
}

</mosaic_0001>

<bundles_post_ra>
// kernel: tpu_custom_call.1
= control target key start
LH: loop header
LB: loop body
LE: loop exit
PB: predicated region body
PF: predicated region fallthrough
CT: control target
= control target key end

     0   :  { %10 = vsyncpa [#allocation3], 0  ;;  %s284_s0 = inlined_call_operand.vmem [shape: f32[5,8], index: 0, kind: input, shape index: {}]   ;;  %s285_s1 = inlined_call_operand.hbm [shape: f32[4,5], index: 1, kind: input, shape index: {}]   ;;  %s286_s2 = inlined_call_operand.vmem [shape: f32[4,1], index: 2, kind: input, shape index: {}]   ;;  %s287_s3 = inlined_call_operand.vmem [shape: f32[2,4], index: 3, kind: input, shape index: {}]   ;;  %s288_s4 = inlined_call_operand.vmem [shape: f32[2,1], index: 4, kind: input, shape index: {}]   ;;  %s289_s5 = inlined_call_operand.hbm [shape: f32[2,8], index: 5, kind: output, shape index: {}]  }
   0x1   :  { %11 = vsyncpa [#allocation4], 0  ;;  %s229_s18 = smov [#allocation2]  }
   0x2   :  { %s20_s19 = sshll.u32 %s229_s18, 4  ;;  %s21_s19 = int_to_ptr.vmem [resolvable:$true] %s20_s19 }
   0x3   :  { %s193_s20 = scalar_lea.vmem %s21_s19, 64  ;;  %p198_p1 = scmp.lt.s32.totalorder %s21_s19, %s21_s19 }
   0x4   :  { %p194_p0 = scmp.ne.s32.totalorder %s21_s19, %s193_s20  ;;  %p199_p2 = scmp.lt.s32.totalorder %s193_s20, %s193_s20 }
   0x6   :  { %p200_p3 = por %p199_p2, %p198_p1 }
   0x8   :  { %p201_p4 = pnand %p200_p3, %p194_p0 }
   0xa   :  { %204 = shalt.err (!%p201_p4)
}
   0xb   :  { %23 = dma.hbm_to_vmem [thread:$0]  %s285_s1, 64, %s21_s19, [#allocation3]  }
   0xc   :  { %225 = dma.done.wait [#allocation3], 64  }
   0xd   :  { %226 = vsyncadd [#allocation3], 4294967232  ;;  %v230_v0 = vmov 1   ;;  %v231_v1 = vmov 0   ;;  %v34_v2 = vld [vmem:[#allocation2] sm:$0xf]  ;;  %v47_v9 = vlaneseq }
   0xe   :  { %172 = vset.pattern.permute.xlu1 %v230_v0  ;;  %171 = vset.pattern.permute.xlu0 %v231_v1  ;;  %v36_v3 = vld [vmem:[%s286_s2] sm:$0xf]  ;;  %v232_v4 = vmov 2   ;;  %v233_v5 = vmov 3   ;;  %v234_v6 = vmov 4   ;;  %vm147_vm0 = vcmask 58368  }
   0xf   :  { %54 = vperm.xlu1 %172, %v34_v2   ;;  %44 = vperm.xlu0 %171, %v34_v2   ;;  %v94_v7 = vld [vmem:[%s288_s4] sm:$0x3]  ;;  %v48_v10 = vshrl.u32 %v47_v9, 7 }
  0x10   :  { %v35_v8 = vld [vmem:[%s287_s3] sm:$0x3] }
  0x11   :  { %v49_v11 = vsub.s32 0, %v48_v10  ;;  %v33_v12 = vld [vmem:[%s284_s0] sm:$0x1f]  ;;  %v59_v13 = vsub.s32 1, %v48_v10  ;;  %v69_v15 = vsub.s32 2, %v48_v10  ;;  %v79_v21 = vsub.s32 3, %v48_v10 }
  0x12   :  { %v89_v22 = vsub.s32 4, %v48_v10  ;;  %s235_s0 = smov [#allocation5]  }
  0x13   :  { %173 = vset.pattern.permute.xlu1 %v232_v4  ;;  %39 = vperm.xlu0 %171, %v36_v3   ;;  %v50_v14 = vrot.slane %v33_v12, %v49_v11  ;;  %v60_v18 = vrot.slane %v33_v12, %v59_v13  ;;  %v70_v20 = vrot.slane %v33_v12, %v69_v15  ;;  %s155_s3 = sshll.u32 %s235_s0, 4  ;;  %s156_s3 = int_to_ptr.vmem [resolvable:$true] %s155_s3 }
  0x14   :  { %64 = vperm.xlu1 %173, %v34_v2   ;;  %v80_v28 = vrot.slane %v33_v12, %v79_v21  ;;  %v90_v30 = vrot.slane %v33_v12, %v89_v22  ;;  %s205_s4 = scalar_lea.vmem %s156_s3, 32  ;;  %p210_p6 = scmp.lt.s32.totalorder %s156_s3, %s156_s3 }
  0x15   :  { %p206_p5 = scmp.ne.s32.totalorder %s156_s3, %s205_s4  ;;  %p211_p7 = scmp.lt.s32.totalorder %s205_s4, %s205_s4 }
  0x17   :  { %174 = vset.pattern.permute.xlu0 %v233_v5  ;;  %p212_p8 = por %p211_p7, %p210_p6 }
  0x18   :  { %175 = vset.pattern.permute.xlu1 %v234_v6  ;;  %74 = vperm.xlu0 %174, %v34_v2  }
  0x19   :  { %84 = vperm.xlu1 %175, %v34_v2   ;;  %p213_p9 = pnand %p212_p8, %p206_p5 }
  0x1c   :  { %177 = vset.pattern.permute.xlu0 %v231_v1 }
  0x1d   :  { %176 = vset.pattern.permute.xlu1 %v231_v1  ;;  %97 = vperm.xlu0 %177, %v94_v7  }
  0x1e   :  { %102 = vperm.xlu1 %176, %v35_v8  }
  0x21   :  { %180 = vset.pattern.permute.xlu0 %v233_v5 }
  0x22   :  { %178 = vset.pattern.permute.xlu1 %v230_v0  ;;  %132 = vperm.xlu0 %180, %v35_v8  }
  0x23   :  { %112 = vperm.xlu1 %178, %v35_v8  }
  0x27   :  { %179 = vset.pattern.permute.xlu1 %v232_v4 }
  0x28   :  { %122 = vperm.xlu1 %179, %v35_v8  }
  0x8a   :  { %v55_v16 = vpop.permute.xlu1 %54  ;;  %v45_v17 = vpop.permute.xlu0 %44 }
  0x8b   :  { %v51_v19 = vmul.f32 %v50_v14, %v45_v17  ;;  %v61_v24 = vmul.f32 %v60_v18, %v55_v16 }
  0x8e   :  { %v40_v23 = vpop.permute.xlu0 %39 }
  0x8f   :  { %v52_v25 = vadd.f32 %v51_v19, %v40_v23  ;;  %v65_v26 = vpop.permute.xlu1 %64 }
  0x90   :  { %v71_v27 = vmul.f32 %v70_v20, %v65_v26 }
  0x91   :  { %v62_v29 = vadd.f32 %v61_v24, %v52_v25 }
  0x93   :  { %v72_v31 = vadd.f32 %v71_v27, %v62_v29  ;;  %v75_v32 = vpop.permute.xlu0 %74 }
  0x94   :  { %v81_v33 = vmul.f32 %v80_v28, %v75_v32  ;;  %v85_v34 = vpop.permute.xlu1 %84 }
  0x95   :  { %v91_v35 = vmul.f32 %v90_v30, %v85_v34 }
  0x96   :  { %v82_v36 = vadd.f32 %v81_v33, %v72_v31 }
  0x98   :  { %v92_v37 = vadd.f32 %v91_v35, %v82_v36  ;;  %v98_v42 = vpop.permute.xlu0 %97 }
  0x99   :  { %v103_v38 = vpop.permute.xlu1 %102 }
  0x9a   :  { %v93_v39 = vmax.f32 %v92_v37, 0.0 }
  0x9c   :  { %v108_v40 = vrot.slane %v93_v39, %v49_v11  ;;  %v118_v41 = vrot.slane %v93_v39, %v59_v13  ;;  %v138_v47 = vrot.slane %v93_v39, %v79_v21  ;;  %v128_v48 = vrot.slane %v93_v39, %v69_v15 }
  0x9d   :  { %v133_v49 = vpop.permute.xlu0 %132 }
  0x9e   :  { %v109_v43 = vmul.f32 %v108_v40, %v103_v38  ;;  %v113_v44 = vpop.permute.xlu1 %112  ;;  %v139_v53 = vmul.f32 %v138_v47, %v133_v49 }
  0x9f   :  { %v119_v46 = vmul.f32 %v118_v41, %v113_v44 }
  0xa0   :  { %v110_v45 = vadd.f32 %v109_v43, %v98_v42 }
  0xa2   :  { %v120_v51 = vadd.f32 %v119_v46, %v110_v45 }
  0xa3   :  { %v123_v50 = vpop.permute.xlu1 %122 }
  0xa4   :  { %v129_v52 = vmul.f32 %v128_v48, %v123_v50 }
  0xa6   :  { %v130_v54 = vadd.f32 %v129_v52, %v120_v51 }
  0xa8   :  { %v140_v55 = vadd.f32 %v139_v53, %v130_v54 }
  0xaa   :  { %v141_v56 = vsub.f32 0.0, %v140_v55 }
  0xac   :  { %v142_v57 = vmul.f32 1.442695, %v141_v56 }
  0xae   :  { %181 = vpow2.f32 %v142_v57 }
  0xbb   :  { %v182_v58 = vpop.eup %181 }
  0xbc   :  { %v144_v59 = vadd.f32 1.0, %v182_v58 }
  0xbe   :  { %183 = vrcp.f32 %v144_v59 }
  0xcb   :  { %v184_v60 = vpop.eup %183 }
  0xcc   :  { %148 = vst.msk [vmem:[#allocation5] sm:$0x3] %vm147_vm0, %v184_v60 }
  0xcd   :  { %216 = shalt.err (!%p213_p9)
}
  0xce   :  { %158 = dma.vmem_to_hbm [thread:$0]  %s156_s3, 32, %s289_s5, [#allocation4]  }
  0xcf   :  { %227 = dma.done.wait [#allocation4], 32  }
  0xd0   :  { %228 = vsyncadd [#allocation4], 4294967264 }
  0xd1   :  { %162 = vsyncpa [#allocation3], 1 }
  0xd2   :  { %163 = vsyncpa [#allocation4], 1 }

</bundles_post_ra>
